<compile_context>
chip_gen: v7x
topology: tpu7x:2x2x1
jax: 0.10.0
libtpu: 0.0.40
codegen_flags: <defaults>
</compile_context>

<pallas_src>
import functools

import jax
import jax.numpy as jnp
from jax.experimental import pallas as pl
from jax.experimental.pallas import tpu as pltpu

EPSILON = 1e-6
_LANES = 128


def _dice_loss_kernel(x_ref, t_ref, inter_ref, denom_ref, inter_acc, denom_acc,
                      *, tile_rows, r_valid, needs_mask):
    k = pl.program_id(1)
    last = pl.num_programs(1) - 1

    @pl.when(k == 0)
    def _():
        inter_acc[...] = jnp.zeros_like(inter_acc)
        denom_acc[...] = jnp.zeros_like(denom_acc)

    x = x_ref[...].astype(jnp.float32)          # (tile_rows, 128)
    t = t_ref[...].astype(jnp.float32)

    # sigmoid(x) == 0.5 * tanh(0.5 * x) + 0.5  -> single EUP transcendental
    p = 0.5 * jnp.tanh(0.5 * x) + 0.5

    def accum(p_v, t_v):
        # In-tile tree add: reshape keeps the (8,128) vreg tiles intact, so the
        # leading-axis sum is a chain of pure VPU vreg adds (no XLU), and only
        # one (8,128) accumulator vreg is loaded/stored per stream per step.
        inter_acc[...] += jnp.sum(
            (p_v * t_v).reshape(tile_rows // 8, 8, _LANES), axis=0)
        denom_acc[...] += jnp.sum(
            (p_v + t_v).reshape(tile_rows // 8, 8, _LANES), axis=0)

    if needs_mask:
        # Only the last k block can contain invalid (clipped-DMA) rows; keep
        # the masking cost out of every other step.
        @pl.when(k != last)
        def _():
            accum(p, t)

        @pl.when(k == last)
        def _():
            rows = jax.lax.broadcasted_iota(jnp.int32, (tile_rows, _LANES), 0)
            valid = (k * tile_rows + rows) < r_valid
            accum(jnp.where(valid, p, 0.0), jnp.where(valid, t, 0.0))
    else:
        accum(p, t)

    @pl.when(k == last)
    def _():
        # Single-vreg reductions (XLU), once per batch row.
        inter_ref[...] = jnp.reshape(jnp.sum(inter_acc[...]), (1, 1, 1))
        denom_ref[...] = jnp.reshape(jnp.sum(denom_acc[...]), (1, 1, 1))


def _min_sublane_multiple(dt):
    # f32 -> 8, bf16/f16 -> 16, int8/fp8 -> 32 (sublane packing of the block).
    return {4: 8, 2: 16, 1: 32}.get(jnp.dtype(dt).itemsize, 8)


def dice_loss(x, target, *, epsilon=EPSILON, reduction='mean', tile_rows=2048):
    """Pallas implementation of DiceLoss.forward (3D or 4D inputs)."""
    if x.ndim not in (3, 4):
        raise ValueError('Input and target must be 3D or 4D tensors')
    B = x.shape[0]
    x2 = x.reshape(B, -1)
    t2 = target.reshape(B, -1)
    N = x2.shape[1]

    R = N // _LANES            # full 128-lane rows handled by the kernel
    tail = N - R * _LANES      # ragged tail (< 128 per row) handled in JAX

    inter = jnp.zeros((B,), jnp.float32)
    denom = jnp.zeros((B,), jnp.float32)

    if R > 0:
        if tail:
            # TODO(synk): the ragged-N fallback makes one slice copy of the
            # 128-aligned prefix; the common case N % 128 == 0 is copy-free.
            x_main = x2[:, :R * _LANES]
            t_main = t2[:, :R * _LANES]
        else:
            x_main = x2
            t_main = t2
        x3 = x_main.reshape(B, R, _LANES)
        t3 = t_main.reshape(B, R, _LANES)

        # Block height: respect the dtype's minimum sublane tile, clamp to the
        # (rounded-up) row count.  Default 2048 rows x 128 lanes x 4B = 1 MiB
        # per input block; 2 inputs x 2 pipeline buffers + two (8,128)
        # accumulators ~ 4 MiB VMEM -- inside the default scoped limit on
        # v5e (16 MiB) / v6e / v7x (32 MiB).
        sub = max(_min_sublane_multiple(x.dtype),
                  _min_sublane_multiple(target.dtype))
        r_rounded = ((R + sub - 1) // sub) * sub
        tr = int(min(max(sub, (tile_rows // sub) * sub), r_rounded))
        num_k = pl.cdiv(R, tr)
        needs_mask = (num_k * tr) != R

        kernel = functools.partial(
            _dice_loss_kernel,
            tile_rows=tr,
            r_valid=R,
            needs_mask=needs_mask,
        )

        inter_o, denom_o = pl.pallas_call(
            kernel,
            out_shape=(jax.ShapeDtypeStruct((B, 1, 1), jnp.float32),
                       jax.ShapeDtypeStruct((B, 1, 1), jnp.float32)),
            grid_spec=pltpu.PrefetchScalarGridSpec(
                num_scalar_prefetch=0,
                grid=(B, num_k),
                in_specs=[
                    pl.BlockSpec((None, tr, _LANES), lambda b, k: (b, k, 0)),
                    pl.BlockSpec((None, tr, _LANES), lambda b, k: (b, k, 0)),
                ],
                out_specs=[
                    pl.BlockSpec((1, 1, 1), lambda b, k: (b, 0, 0)),
                    pl.BlockSpec((1, 1, 1), lambda b, k: (b, 0, 0)),
                ],
                scratch_shapes=[
                    pltpu.VMEM((8, _LANES), jnp.float32),   # intersection acc
                    pltpu.VMEM((8, _LANES), jnp.float32),   # denominator acc
                ],
            ),
            compiler_params=pltpu.CompilerParams(
                dimension_semantics=("parallel", "arbitrary")),
        )(x3, t3)

        inter = inter + inter_o[:, 0, 0]
        denom = denom + denom_o[:, 0, 0]

    if tail:
        # Ragged tail: < 128 elements per row -- trivially cheap in plain JAX.
        x_t = x2[:, R * _LANES:].astype(jnp.float32)
        t_t = t2[:, R * _LANES:].astype(jnp.float32)
        p_t = jax.nn.sigmoid(x_t)
        inter = inter + jnp.sum(p_t * t_t, axis=1)
        denom = denom + jnp.sum(p_t + t_t, axis=1)

    loss = 1.0 - (2.0 * inter + epsilon) / (denom + epsilon)
    if reduction == 'sum':
        return jnp.sum(loss)
    return jnp.mean(loss)


def _reference(x, target, epsilon=EPSILON, reduction='mean'):
    B = x.shape[0]
    p = jax.nn.sigmoid(x.astype(jnp.float32)).reshape(B, -1)
    t = target.astype(jnp.float32).reshape(B, -1)
    inter = (2.0 * p * t).sum(axis=1)
    denom = p.sum(axis=1) + t.sum(axis=1) + epsilon
    loss = 1.0 - (inter + epsilon) / denom
    return loss.sum() if reduction == 'sum' else loss.mean()


if __name__ == "__main__":
    key = jax.random.PRNGKey(0)
    k1, k2 = jax.random.split(key)
    # 4D case: (B, C, H, W) like PyTorch NCHW segmentation logits / masks.
    x = jax.random.normal(k1, (2, 4, 16, 16), dtype=jnp.float32)
    target = (jax.random.uniform(k2, (2, 4, 16, 16)) > 0.5).astype(jnp.float32)

    out = dice_loss(x, target, reduction='mean')
    out = jax.block_until_ready(out)

    ref = _reference(x, target, reduction='mean')
    assert jnp.allclose(out, ref, atol=1e-5, rtol=1e-5), (out, ref)

    print("KERNEL_OK")
</pallas_src>

<mosaic_0001>
module attributes {stable_mosaic.version = 11 : i64} {
  func.func @_dice_loss_kernel(%arg0: i32, %arg1: i32, %arg2: memref<1x8x128xf32, #tpu.memory_space<vmem>>, %arg3: memref<1x8x128xf32, #tpu.memory_space<vmem>>, %arg4: memref<1x1x1xf32, #tpu.memory_space<vmem>>, %arg5: memref<1x1x1xf32, #tpu.memory_space<vmem>>, %arg6: memref<8x128xf32, #tpu.memory_space<vmem>>, %arg7: memref<8x128xf32, #tpu.memory_space<vmem>>) attributes {dimension_semantics = [#tpu.dimension_semantics<parallel>, #tpu.dimension_semantics<arbitrary>], iteration_bounds = array<i64: 2, 1>, scalar_prefetch = 0 : i64, scratch_operands = 2 : i64, tpu.core_type = #tpu.core_type<tc>, window_params = [{transform_indices = @transform_0, window_bounds = array<i64: 1, 8, 128>}, {transform_indices = @transform_1, window_bounds = array<i64: 1, 8, 128>}, {transform_indices = @transform_2, window_bounds = array<i64: 1, 1, 1>}, {transform_indices = @transform_3, window_bounds = array<i64: 1, 1, 1>}]} {
    %c0_i32 = arith.constant 0 : i32
    %0 = arith.cmpi eq, %arg1, %c0_i32 : i32
    %1 = arith.extui %0 : i1 to i32
    %c0_i32_0 = arith.constant 0 : i32
    %2 = arith.cmpi ne, %1, %c0_i32_0 : i32
    scf.if %2 {
      %cst_20 = arith.constant 0.000000e+00 : f32
      %29 = vector.broadcast %cst_20 : f32 to vector<8x128xf32>
      %c0_21 = arith.constant 0 : index
      %c0_22 = arith.constant 0 : index
      %30 = vector.load %arg6[%c0_21, %c0_22] : memref<8x128xf32, #tpu.memory_space<vmem>>, vector<8x128xf32>
      tpu.vector_store %arg6[%c0_21, %c0_22], %29 {strides = array<i32>} : memref<8x128xf32, #tpu.memory_space<vmem>>, vector<8x128xf32>,
      %cst_23 = arith.constant 0.000000e+00 : f32
      %31 = vector.broadcast %cst_23 : f32 to vector<8x128xf32>
      %c0_24 = arith.constant 0 : index
      %c0_25 = arith.constant 0 : index
      %32 = vector.load %arg7[%c0_24, %c0_25] : memref<8x128xf32, #tpu.memory_space<vmem>>, vector<8x128xf32>
      tpu.vector_store %arg7[%c0_24, %c0_25], %31 {strides = array<i32>} : memref<8x128xf32, #tpu.memory_space<vmem>>, vector<8x128xf32>,
    } else {
    }
    %c0 = arith.constant 0 : index
    %c0_1 = arith.constant 0 : index
    %c0_2 = arith.constant 0 : index
    %3 = vector.load %arg2[%c0, %c0_1, %c0_2] : memref<1x8x128xf32, #tpu.memory_space<vmem>>, vector<1x8x128xf32>
    %4 = vector.shape_cast %3 : vector<1x8x128xf32> to vector<8x128xf32>
    %c0_3 = arith.constant 0 : index
    %c0_4 = arith.constant 0 : index
    %c0_5 = arith.constant 0 : index
    %5 = vector.load %arg3[%c0_3, %c0_4, %c0_5] : memref<1x8x128xf32, #tpu.memory_space<vmem>>, vector<1x8x128xf32>
    %6 = vector.shape_cast %5 : vector<1x8x128xf32> to vector<8x128xf32>
    %cst = arith.constant 5.000000e-01 : f32
    %7 = vector.broadcast %cst : f32 to vector<8x128xf32>
    %8 = arith.mulf %7, %4 : vector<8x128xf32>
    %9 = math.tanh %8 : vector<8x128xf32>
    %cst_6 = arith.constant 5.000000e-01 : f32
    %10 = vector.broadcast %cst_6 : f32 to vector<8x128xf32>
    %11 = arith.mulf %10, %9 : vector<8x128xf32>
    %cst_7 = arith.constant 5.000000e-01 : f32
    %12 = vector.broadcast %cst_7 : f32 to vector<8x128xf32>
    %13 = arith.addf %11, %12 : vector<8x128xf32>
    %c0_8 = arith.constant 0 : index
    %c0_9 = arith.constant 0 : index
    %14 = vector.load %arg6[%c0_8, %c0_9] : memref<8x128xf32, #tpu.memory_space<vmem>>, vector<8x128xf32>
    %15 = arith.mulf %13, %6 : vector<8x128xf32>
    %16 = vector.shape_cast %15 : vector<8x128xf32> to vector<1x8x128xf32>
    %cst_10 = arith.constant dense<0.000000e+00> : vector<8x128xf32>
    %17 = vector.multi_reduction <add>, %16, %cst_10 [0] : vector<1x8x128xf32> to vector<8x128xf32>
    %18 = arith.addf %14, %17 : vector<8x128xf32>
    %c0_11 = arith.constant 0 : index
    %c0_12 = arith.constant 0 : index
    %19 = vector.load %arg6[%c0_11, %c0_12] : memref<8x128xf32, #tpu.memory_space<vmem>>, vector<8x128xf32>
    tpu.vector_store %arg6[%c0_11, %c0_12], %18 {strides = array<i32>} : memref<8x128xf32, #tpu.memory_space<vmem>>, vector<8x128xf32>,
    %c0_13 = arith.constant 0 : index
    %c0_14 = arith.constant 0 : index
    %20 = vector.load %arg7[%c0_13, %c0_14] : memref<8x128xf32, #tpu.memory_space<vmem>>, vector<8x128xf32>
    %21 = arith.addf %13, %6 : vector<8x128xf32>
    %22 = vector.shape_cast %21 : vector<8x128xf32> to vector<1x8x128xf32>
    %cst_15 = arith.constant dense<0.000000e+00> : vector<8x128xf32>
    %23 = vector.multi_reduction <add>, %22, %cst_15 [0] : vector<1x8x128xf32> to vector<8x128xf32>
    %24 = arith.addf %20, %23 : vector<8x128xf32>
    %c0_16 = arith.constant 0 : index
    %c0_17 = arith.constant 0 : index
    %25 = vector.load %arg7[%c0_16, %c0_17] : memref<8x128xf32, #tpu.memory_space<vmem>>, vector<8x128xf32>
    tpu.vector_store %arg7[%c0_16, %c0_17], %24 {strides = array<i32>} : memref<8x128xf32, #tpu.memory_space<vmem>>, vector<8x128xf32>,
    %c0_i32_18 = arith.constant 0 : i32
    %26 = arith.cmpi eq, %arg1, %c0_i32_18 : i32
    %27 = arith.extui %26 : i1 to i32
    %c0_i32_19 = arith.constant 0 : i32
    %28 = arith.cmpi ne, %27, %c0_i32_19 : i32
    scf.if %28 {
      %c0_20 = arith.constant 0 : index
      %c0_21 = arith.constant 0 : index
      %29 = vector.load %arg6[%c0_20, %c0_21] : memref<8x128xf32, #tpu.memory_space<vmem>>, vector<8x128xf32>
      %30 = vector.shape_cast %29 : vector<8x128xf32> to vector<1x8x128xf32>
      %cst_22 = arith.constant dense<0.000000e+00> : vector<1xf32>
      %31 = vector.multi_reduction <add>, %30, %cst_22 [1, 2] : vector<1x8x128xf32> to vector<1xf32>
      %32 = vector.shape_cast %31 : vector<1xf32> to vector<1x1x1xf32>
      %33 = vector.extract %32[0, 0, 0] : f32 from vector<1x1x1xf32>
      %34 = vector.broadcast %33 : f32 to vector<1x1x1xf32>
      %c0_23 = arith.constant 0 : index
      %c0_24 = arith.constant 0 : index
      %c0_25 = arith.constant 0 : index
      %35 = vector.load %arg4[%c0_23, %c0_24, %c0_25] : memref<1x1x1xf32, #tpu.memory_space<vmem>>, vector<1x1x1xf32>
      tpu.vector_store %arg4[%c0_23, %c0_24, %c0_25], %34 {strides = array<i32>} : memref<1x1x1xf32, #tpu.memory_space<vmem>>, vector<1x1x1xf32>,
      %c0_26 = arith.constant 0 : index
      %c0_27 = arith.constant 0 : index
      %36 = vector.load %arg7[%c0_26, %c0_27] : memref<8x128xf32, #tpu.memory_space<vmem>>, vector<8x128xf32>
      %37 = vector.shape_cast %36 : vector<8x128xf32> to vector<1x8x128xf32>
      %cst_28 = arith.constant dense<0.000000e+00> : vector<1xf32>
      %38 = vector.multi_reduction <add>, %37, %cst_28 [1, 2] : vector<1x8x128xf32> to vector<1xf32>
      %39 = vector.shape_cast %38 : vector<1xf32> to vector<1x1x1xf32>
      %40 = vector.extract %39[0, 0, 0] : f32 from vector<1x1x1xf32>
      %41 = vector.broadcast %40 : f32 to vector<1x1x1xf32>
      %c0_29 = arith.constant 0 : index
      %c0_30 = arith.constant 0 : index
      %c0_31 = arith.constant 0 : index
      %42 = vector.load %arg5[%c0_29, %c0_30, %c0_31] : memref<1x1x1xf32, #tpu.memory_space<vmem>>, vector<1x1x1xf32>
      tpu.vector_store %arg5[%c0_29, %c0_30, %c0_31], %41 {strides = array<i32>} : memref<1x1x1xf32, #tpu.memory_space<vmem>>, vector<1x1x1xf32>,
    } else {
    }
    return
  }
  func.func @transform_0(%arg0: i32, %arg1: i32) -> (i32, i32, i32) {
    %c0_i32 = arith.constant 0 : i32
    %c0_i32_0 = arith.constant 0 : i32
    return %arg0, %arg1, %c0_i32 : i32, i32, i32
  }
  func.func @transform_1(%arg0: i32, %arg1: i32) -> (i32, i32, i32) {
    %c0_i32 = arith.constant 0 : i32
    %c0_i32_0 = arith.constant 0 : i32
    return %arg0, %arg1, %c0_i32 : i32, i32, i32
  }
  func.func @transform_2(%arg0: i32, %arg1: i32) -> (i32, i32, i32) {
    %c0_i32 = arith.constant 0 : i32
    %c0_i32_0 = arith.constant 0 : i32
    %c0_i32_1 = arith.constant 0 : i32
    return %arg0, %c0_i32, %c0_i32_0 : i32, i32, i32
  }
  func.func @transform_3(%arg0: i32, %arg1: i32) -> (i32, i32, i32) {
    %c0_i32 = arith.constant 0 : i32
    %c0_i32_0 = arith.constant 0 : i32
    %c0_i32_1 = arith.constant 0 : i32
    return %arg0, %c0_i32, %c0_i32_0 : i32, i32, i32
  }
}

</mosaic_0001>

<bundles_post_ra>
// kernel: tpu_custom_call.1
= control target key start
LH: loop header
LB: loop body
LE: loop exit
PB: predicated region body
PF: predicated region fallthrough
CT: control target
= control target key end

     0   :  { %9 = vsyncpa [#allocation5], 0  ;;  %s807_s0 = inlined_call_operand.hbm [shape: f32[2,8,128], index: 0, kind: input, shape index: {}]   ;;  %s808_s1 = inlined_call_operand.hbm [shape: f32[2,8,128], index: 1, kind: input, shape index: {}]   ;;  %s809_s2 = inlined_call_operand.vmem [shape: f32[2,1,1], index: 2, kind: output, shape index: {0}]   ;;  %s810_s3 = inlined_call_operand.vmem [shape: f32[2,1,1], index: 3, kind: output, shape index: {1}]  }
   0x1   :  { %11 = vsyncpa [#allocation5 + $0x1], 0 }
   0x2   :  { %12 = vsyncpa [#allocation7], 0 }
   0x3   :  { %14 = vsyncpa [#allocation7 + $0x1], 0  ;;  %s632_s12 = smov 0   ;;  %s634_s13 = smov 0  }
   0x4   :  { %s636_s14 = smov 0   ;;  %s638_s15 = smov 0  }
   0x5   :  { %s640_s16 = smov 0   ;;  %s642_s17 = smov 0  }
   0x6 LB: > { %s415_s18 = sadd.s32 4294967295, %s608_s17   ;;  %s32_s19 = sadd.s32 1, %s604_s16  ;;  %s608_s17 = sphi %s642_s17, %s20_s17   ;;  %s604_s16 = sphi %s640_s16, %s824_s16   ;;  %s600_s15 = sphi %s638_s15, %s823_s15   ;;  %s596_s14 = sphi %s636_s14, %s822_s14   ;;  %s592_s13 = sphi %s634_s13, %s821_s13   ;;  %s588_s12 = sphi %s632_s12, %s820_s12  }
   0x7   : > { %p34_p0 = scmp.ge.s32.totalorder %s32_s19, 2  ;;  %s41_s20 = sadd.s32 1, %s596_s14 }
   0x8   : > { %p48_p1 = scmp.ne.s32.totalorder %s596_s14, %s592_s13  ;;  %p49_p2 = scmp.eq.s32.totalorder %s608_s17, 0 }
   0x9   : > { %s826_s19 = smov (%p34_p0, %s32_s19), 0  ;;  %p54_p4 = scmp.ne.s32.totalorder %s592_s13, %s588_s12 }
   0xa   : > { %p668_p3 = por %p49_p2, %p48_p1  ;;  %s36_s22 = ssub.s32 %s604_s16, %s826_s19 }
   0xb   : > { %p55_p5 = scmp.eq.s32.totalorder %s415_s18, 0  ;;  %p39_p6 = scmp.eq.s32.totalorder %s36_s22, 0 }
   0xc   : > { %p443_p8 = scmp.lt.s32.totalorder %s608_s17, 2  ;;  %s684_s25 = sand.u32 1, %s596_s14  }
   0xd   : > { %p675_p7 = por %p55_p5, %p54_p4  ;;  %s420_s26 = sshll.u32 %s604_s16, 7 }
   0xe   : > { %s681_s24 = scalar_select %p39_p6, %s596_s14, %s41_s20  }
   0xf   : > { %s813_s23 = scalar_select %p675_p7, 1, 0 }
  0x10   : > { %s419_s27 = sshll.u32 %s684_s25, 3  ;;  %s693_s30 = scalar_lea.hbm %s807_s0, %s420_s26 }
  0x11   : > { %s162_s4 = scalar_lea.vmem [#allocation4], %s419_s27  ;;  %p699_p9 = pnand %p443_p8, %p668_p3 }
  0x12   : > { %s170_s5 = sshll.u32 %s162_s4, 4  ;;  %s159_s7 = scalar_lea.sflag [#allocation5], %s684_s25  ;;  %s703_s5 = int_to_ptr.vmem [resolvable:$true] %s170_s5 }
  0x13   : > { %s494_s8 = scalar_lea.hbm %s693_s30, 128  ;;  %p496_p13 = pneg %p699_p9 }
  0x14   : > { %p495_p12 = scmp.ne.s32.totalorder %s693_s30, %s494_s8  ;;  %s499_s11 = scalar_lea.hbm %s807_s0, 256 }
  0x15   : > { %p500_p2 = scmp.lt.u32.totalorder %s693_s30, %s807_s0  ;;  %p501_p3 = scmp.lt.u32.totalorder %s499_s11, %s494_s8 }
  0x16   : > { %p497_p0 = pnand %p496_p13, %p495_p12  ;;  %p503_p5 = scmp.lt.u32.totalorder %s494_s8, %s693_s30 }
  0x17   : > { %p502_p4 = por %p501_p3, %p500_p2 }
  0x18   : > { %p498_p1 = pneg %p497_p0 }
  0x19   : > { %p504_p6 = por %p503_p5, %p502_p4 }
  0x1b   : > { %p505_p8 = pnand %p504_p6, %p498_p1 }
  0x1d   : > { %508 = shalt.err (!%p505_p8)
}
  0x1e   : > { %s509_s20 = scalar_lea.vmem %s703_s5, 128  ;;  %s610_s21 = smov [#allocation4]  }
  0x1f   : > { %p510_p12 = scmp.ne.s32.totalorder %s703_s5, %s509_s20  ;;  %s514_s22 = sshll.u32 %s610_s21, 4  ;;  %s515_s22 = int_to_ptr.vmem [resolvable:$false] %s514_s22 }
  0x20   : > { %s516_s28 = scalar_lea.vmem %s515_s22, 256  ;;  %p517_p11 = scmp.lt.s32.totalorder %s703_s5, %s515_s22 }
  0x21   : > { %p512_p0 = pnand %p510_p12, %p496_p13  ;;  %p518_p2 = scmp.lt.s32.totalorder %s516_s28, %s509_s20 }
  0x23   : > { %p513_p10 = pneg %p512_p0  ;;  %p519_p3 = por %p518_p2, %p517_p11 }
  0x25   : > { %p520_p4 = pnand %p519_p3, %p513_p10 }
  0x27   : > { %523 = shalt.err (!%p520_p4)
}
  0x28   : > { %439 = dma.hbm_to_vmem [thread:$0]  (!%p699_p9), %s693_s30, 128, %s703_s5, %s159_s7  }
  0x29   : > { %p815_p1 = scmp.lt.s32.totalorder %s608_s17, 3  ;;  %p816_p5 = scmp.ge.s32.totalorder %s608_s17, 1 }
  0x2a   : > { %s746_s9 = scalar_lea.hbm %s808_s1, %s420_s26  ;;  %s181_s10 = scalar_lea.vmem [#allocation6], %s419_s27 }
  0x2b   : > { %p737_p6 = pnand %p816_p5, %p815_p1  ;;  %s189_s11 = sshll.u32 %s181_s10, 4  ;;  %s190_s11 = int_to_ptr.vmem [resolvable:$true] %s189_s11 }
  0x2c   : > { %s178_s30 = scalar_lea.sflag [#allocation7], %s684_s25  ;;  %s524_s5 = scalar_lea.hbm %s746_s9, 128 }
  0x2d   : > { %s817_s29 = scalar_select %p737_p6, 1, 0 }
  0x2e   : > { %p525_p10 = scmp.ne.s32.totalorder %s746_s9, %s524_s5  ;;  %s529_s26 = scalar_lea.hbm %s808_s1, 256 }
  0x2f   : > { %p530_p12 = scmp.lt.u32.totalorder %s746_s9, %s808_s1  ;;  %p531_p0 = scmp.lt.u32.totalorder %s529_s26, %s524_s5 }
  0x30   : > { %p527_p11 = pnand %p525_p10, %p496_p13  ;;  %p533_p3 = scmp.lt.u32.totalorder %s524_s5, %s746_s9 }
  0x31   : > { %p532_p2 = por %p531_p0, %p530_p12 }
  0x32   : > { %p528_p8 = pneg %p527_p11 }
  0x33   : > { %p534_p4 = por %p533_p3, %p532_p2 }
  0x35   : > { %p535_p1 = pnand %p534_p4, %p528_p8 }
  0x37   : > { %538 = shalt.err (!%p535_p1)
}
  0x38   : > { %s539_s25 = scalar_lea.vmem %s190_s11, 128  ;;  %s611_s27 = smov [#allocation6]  }
  0x39   : > { %p540_p5 = scmp.ne.s32.totalorder %s190_s11, %s539_s25  ;;  %s544_s21 = sshll.u32 %s611_s27, 4  ;;  %s545_s21 = int_to_ptr.vmem [resolvable:$false] %s544_s21 }
  0x3a   : > { %s546_s22 = scalar_lea.vmem %s545_s21, 256  ;;  %p547_p7 = scmp.lt.s32.totalorder %s190_s11, %s545_s21 }
  0x3b   : > { %p542_p10 = pnand %p540_p5, %p496_p13  ;;  %p548_p6 = scmp.lt.s32.totalorder %s546_s22, %s539_s25 }
  0x3d   : > { %p543_p11 = pneg %p542_p10  ;;  %p549_p0 = por %p548_p6, %p547_p7 }
  0x3f   : > { %p550_p12 = pnand %p549_p0, %p543_p11 }
  0x41   : > { %553 = shalt.err (!%p550_p12)
}
  0x42   : > { %442 = dma.hbm_to_vmem [thread:$0]  (!%p699_p9), %s746_s9, 128, %s190_s11, %s178_s30  }
  0x43   : > { %p818_p8 = scmp.ne.s32.totalorder %s817_s29, 0 }
  0x44   : > { %s200_s28 = sand.u32 (!%p818_p8), 1, %s592_s13   ;;  %p819_p13 = scmp.ne.s32.totalorder (!%p818_p8), %s813_s23, 0 }
  0x45   : > { %198 = sbr.rel (%p818_p8) target bundleno = 309 (0x135), region = 28  ;;  %s424_s4 = sshll.u32 (!%p818_p8), %s200_s28, 3 }
  0x46   : > { %s201_s8 = scalar_lea.sflag (!%p818_p8), [#allocation5], %s200_s28  ;;  %s204_s10 = scalar_lea.vmem (!%p818_p8), [#allocation4], %s424_s4 }
  0x4c   : > { %579 = dma.done.wait (%p819_p13), %s201_s8, 128  }
  0x4d   : > { %581 = vsyncadd (%p819_p13), %s201_s8, 4294967168  ;;  %s210_s5 = scalar_lea.sflag [#allocation7], %s200_s28  ;;  %s213_s7 = scalar_lea.vmem [#allocation6], %s424_s4 }
  0x4e   : > { %583 = dma.done.wait (%p819_p13), %s210_s5, 128  }
  0x4f   : > { %585 = vsyncadd (%p819_p13), %s210_s5, 4294967168  ;;  %v254_v0 = vld [vmem:[%s204_s10] sm:$0xff]  ;;  %v255_v4 = vld [vmem:[%s213_s7] sm:$0xff]  ;;  %p242_p7 = scmp.lt.s32.totalorder %s600_s15, 1  ;;  %vm284_vm0 = vcmask 0  }
  0x50   : > { %v256_v1 = vmul.f32 0.5, %v254_v0 }
  0x51   : > { %s828_s15 = smov (!%p242_p7, %s600_s15), 1 }
  0x52   : > { %492 = vtanh.f32 %v256_v1  ;;  %s244_s29 = scalar_lea.vmem %s809_s2, %s828_s15  ;;  %s247_s12 = scalar_lea.vmem %s810_s3, %s828_s15 }
  0x5c   : > { %v493_v2 = vpop.eup %492 }
  0x5d   : > { %v258_v3 = vmul.f32 0.5, %v493_v2 }
  0x5f   : > { %v259_v5 = vadd.f32 0.5, %v258_v3 }
  0x61   : > { %v261_v6 = vmul.f32 %v259_v5, %v255_v4  ;;  %v266_v7 = vadd.f32 %v259_v5, %v255_v4 }
  0x63   : > { %274 = vadd.xlane.f32.xlu0 %v261_v6 }
  0x67   : > { %287 = vadd.xlane.f32.xlu0 %v266_v7 }
  0xf0   : > { %v275_v8 = vpop.xlane.xlu0 %274 }
  0xf1   : > { %v276_v9 = vrot.slane %v275_v8, 4 }
  0xf3   : > { %v277_v10 = vadd.f32 %v276_v9, %v275_v8 }
  0xf4   : > { %v288_v11 = vpop.xlane.xlu0 %287 }
  0xf5   : > { %v278_v12 = vrot.slane %v277_v10, 2  ;;  %v289_v13 = vrot.slane %v288_v11, 4 }
  0xf7   : > { %v290_v14 = vadd.f32 %v289_v13, %v288_v11  ;;  %v279_v15 = vadd.f32 %v278_v12, %v277_v10 }
  0xf9   : > { %v291_v16 = vrot.slane %v290_v14, 2  ;;  %v280_v17 = vrot.slane %v279_v15, 1 }
  0xfb   : > { %v292_v18 = vadd.f32 %v291_v16, %v290_v14  ;;  %v281_v19 = vadd.f32 %v280_v17, %v279_v15 }
  0xfd   : > { %428 = vpush %v281_v19  ;;  %v293_v20 = vrot.slane %v292_v18, 1 }
  0xff   : > { %v294_v21 = vadd.f32 %v293_v20, %v292_v18 }
 0x101   : > { %430 = vpush %v294_v21 }
 0x12e   : > { %s429_s9 = spop %428 }
 0x12f   : > { %v283_v22 = vstv %s429_s9 }
 0x130   : > { %285 = vst.msk [vmem:[%s244_s29] sm:$0x1] %vm284_vm0, %v283_v22 }
 0x132   : > { %s431_s26 = spop %430 }
 0x133   : > { %v296_v23 = vstv %s431_s26 }
 0x134   : > { %297 = vst.msk [vmem:[%s247_s12] sm:$0x1] %vm284_vm0, %v296_v23 }
 0x135 PF: > { %s20_s17 = sadd.s32 1, %s608_s17   ;;  %s820_s12 = smov %s592_s13 }
 0x136   : > { %p17_p9 = scmp.ge.s32.totalorder %s20_s17, 4   ;;  %s821_s13 = smov %s596_s14 }
 0x137   : > { %s822_s14 = smov %s681_s24  ;;  %s823_s15 = smov %s604_s16 }
 0x138   : > { %s824_s16 = smov %s826_s19  ;;  %19 = sbr.rel (!%p17_p9) target bundleno = 6 (0x6), region = 101 }
 0x13f   :  { %327 = vsyncpa [#allocation5], 1 }
 0x140   :  { %329 = vsyncpa [#allocation5 + $0x1], 1 }
 0x141   :  { %330 = vsyncpa [#allocation7], 1 }
 0x142   :  { %332 = vsyncpa [#allocation7 + $0x1], 1 }

</bundles_post_ra>
